<compile_context>
chip_gen: v6e
topology: v6e:2x2x1
jax: 0.10.0
libtpu: 0.0.40
codegen_flags: <defaults>
</compile_context>

<pallas_src>
import functools

import jax
import jax.numpy as jnp
from jax.experimental import pallas as pl
from jax.experimental.pallas import tpu as pltpu

DPT_RES = 384            # hardcoded DPT input resolution in the original module
_MAX_TILE_ROWS = 256     # max rows per (image, row-tile) block in either kernel
_VMEM_LIMIT = 32 * 1024 * 1024


def _split_rows(nrows):
    """Row tiling: >=2 tiles when possible (v7x megacore), tile multiple of 8."""
    if nrows >= 16:
        tile = min(_MAX_TILE_ROWS, ((nrows + 1) // 2 + 7) // 8 * 8)
        nblk = -(-nrows // tile)
    else:
        tile, nblk = nrows, 1
    return tile, nblk


# ----------------------------------------------------------------------------
# Surrogate "DPT" depth inference: per-pixel 1x1 conv over the 3 RGB channels,
# applied at the ORIGINAL resolution (linear, so it commutes with the bilinear
# 384x384 resize; folding it before the resize cuts the resize traffic 3x).
# TODO(synk): the real DPT model is a checkpoint-loaded ViT with no clean
#             in-script Pallas equivalent; this 1x1-conv surrogate (and the
#             fold before the resize) stands in for infer_depth() only.
# ----------------------------------------------------------------------------
def _combine_channels_kernel(x_ref, o_ref, *, w_r, w_g, w_b, bias):
    # x_ref: (1, 3, tile_r, W0) rgb tile;  o_ref: (1, tile_r, W0) surrogate depth
    x = x_ref[...]
    o_ref[...] = w_r * x[:, 0] + w_g * x[:, 1] + w_b * x[:, 2] + bias


def surrogate_depth_lowres(rgbs, weights):
    n, c, h0, w0 = rgbs.shape
    assert c == 3
    w_r, w_g, w_b, bias = (float(v) for v in weights)   # deterministic params
    tile_r, gr = _split_rows(h0)
    kernel = functools.partial(_combine_channels_kernel,
                               w_r=w_r, w_g=w_g, w_b=w_b, bias=bias)
    # Pure elementwise map: boundary row-tiles are safe (out-of-range output
    # rows are simply not written back).
    return pl.pallas_call(
        kernel,
        out_shape=jax.ShapeDtypeStruct((n, h0, w0), jnp.float32),
        grid=(n, gr),
        in_specs=[pl.BlockSpec((1, 3, tile_r, w0), lambda i, j: (i, 0, j, 0))],
        out_specs=pl.BlockSpec((1, tile_r, w0), lambda i, j: (i, j, 0)),
        compiler_params=pltpu.CompilerParams(
            dimension_semantics=("parallel", "parallel"),
            vmem_limit_bytes=_VMEM_LIMIT),
    )(rgbs.astype(jnp.float32))


# ----------------------------------------------------------------------------
# Fused [bilinear 384 -> (H1, W1) upsample] + [masked Pearson statistics].
#   mask = depths > 0 (depth_threshold = 0).
# ----------------------------------------------------------------------------
def _bilinear_matrix(out_size, in_size, rows):
    """(rows, in_size) row-interpolation matrix for bilinear resize with
    half-pixel centers (== torch F.interpolate align_corners=False); rows past
    out_size are zero (padding for the row-tiled BlockSpec)."""
    scale = in_size / out_size
    coords = (jnp.arange(out_size, dtype=jnp.float32) + 0.5) * scale - 0.5
    coords = jnp.clip(coords, 0.0, in_size - 1)
    lo = jnp.floor(coords).astype(jnp.int32)
    hi = jnp.minimum(lo + 1, in_size - 1)
    w_hi = coords - lo.astype(jnp.float32)
    idx = jnp.arange(out_size)
    mat = jnp.zeros((rows, in_size), jnp.float32)
    mat = mat.at[idx, lo].add(1.0 - w_hi)
    mat = mat.at[idx, hi].add(w_hi)
    return mat


def _upsample_pearson_kernel(pred_ref, ah_ref, aw_ref, d_ref, o_ref, *,
                             h1, tile_h1):
    # pred_ref: (1, 384, 384) surrogate depth (resident across row tiles)
    # ah_ref  : (tile_h1, 384) row-interp matrix tile (zero rows past h1)
    # aw_ref  : (W1, 384)      column-interp matrix
    # d_ref   : (1, tile_h1, W1) rendered depth tile (boundary rows undefined)
    # o_ref   : (1, 1, 6, W1)  per-lane partial statistics for this block
    pred = pred_ref[0]
    # Bilinear 384 -> (H1, W1) upsample as two MXU matmuls: A_h @ pred @ A_w^T.
    tmp = jnp.dot(ah_ref[...], pred, preferred_element_type=jnp.float32)
    x = jax.lax.dot_general(tmp, aw_ref[...], (((1,), (1,)), ((), ())),
                            preferred_element_type=jnp.float32)   # (tile_h1, W1)
    y = d_ref[0]
    m = y > 0.0                                    # depth_threshold = 0
    if h1 % tile_h1 != 0:                          # ragged last tile: mask rows
        row = jax.lax.broadcasted_iota(jnp.int32, y.shape, 0)
        m = m & (row + pl.program_id(1) * tile_h1 < h1)
    xm = jnp.where(m, x, 0.0)
    ym = jnp.where(m, y, 0.0)
    one = jnp.where(m, 1.0, 0.0)
    # Per-lane partials: reduce over rows only (VPU vreg adds + one sublane
    # reduce); the cross-lane / cross-block reduce happens in the tiny plain-
    # JAX combine.  NOTE: one-pass f32 sums can lose precision for large,
    # nearly-constant masked depths (cancellation); fine for typical ranges.
    stats = jnp.concatenate(
        [jnp.sum(one, axis=0, keepdims=True),
         jnp.sum(xm, axis=0, keepdims=True),
         jnp.sum(ym, axis=0, keepdims=True),
         jnp.sum(xm * xm, axis=0, keepdims=True),
         jnp.sum(ym * ym, axis=0, keepdims=True),
         jnp.sum(xm * ym, axis=0, keepdims=True)], axis=0)        # (6, W1)
    o_ref[...] = stats[None, None]


def fused_upsample_masked_neg_pearson(pred_depth, depths):
    """-PearsonCorr(resize(pred)[depths>0], depths[depths>0]); 0 if mask empty.
    The 384->(H1,W1) bilinear upsample is fused into the statistics kernel so
    ref_depths never touches HBM."""
    n, h1, w1 = depths.shape
    assert pred_depth.shape == (n, DPT_RES, DPT_RES)
    tile_h1, gh = _split_rows(h1)
    # Separable interpolation matrices (half-pixel centers, matching
    # F.interpolate(..., mode='bilinear', align_corners=False)).
    a_h = _bilinear_matrix(h1, DPT_RES, rows=gh * tile_h1)   # zero-padded rows
    a_w = _bilinear_matrix(w1, DPT_RES, rows=w1)

    kernel = functools.partial(_upsample_pearson_kernel, h1=h1, tile_h1=tile_h1)
    partials = pl.pallas_call(
        kernel,
        out_shape=jax.ShapeDtypeStruct((n, gh, 6, w1), jnp.float32),
        grid=(n, gh),
        in_specs=[
            pl.BlockSpec((1, DPT_RES, DPT_RES), lambda i, j: (i, 0, 0)),
            pl.BlockSpec((tile_h1, DPT_RES), lambda i, j: (j, 0)),
            pl.BlockSpec((w1, DPT_RES), lambda i, j: (0, 0)),
            pl.BlockSpec((1, tile_h1, w1), lambda i, j: (i, j, 0)),
        ],
        out_specs=pl.BlockSpec((1, 1, 6, w1), lambda i, j: (i, j, 0, 0)),
        compiler_params=pltpu.CompilerParams(
            dimension_semantics=("parallel", "parallel"),
            vmem_limit_bytes=_VMEM_LIMIT),
    )(pred_depth.astype(jnp.float32), a_h, a_w, depths.astype(jnp.float32))

    # Tiny combine (sum over blocks AND lanes) + Pearson formula in plain JAX.
    stats = jnp.sum(partials, axis=(0, 1, 3))                 # (6,)
    cnt, sx, sy, sxx, syy, sxy = (stats[i] for i in range(6))
    safe_n = jnp.maximum(cnt, 1.0)
    cov = sxy - sx * sy / safe_n
    vx = jnp.maximum(sxx - sx * sx / safe_n, 0.0)
    vy = jnp.maximum(syy - sy * sy / safe_n, 0.0)
    denom = jnp.sqrt(vx * vy)
    r = jnp.where(denom > 0.0, cov / jnp.where(denom > 0.0, denom, 1.0), 0.0)
    # empty mask -> 0 (matches "if not mask.any(): return 0"); constant /
    # single-element masked sets also return 0 (torchmetrics would give NaN).
    return jnp.where(cnt > 0.0, -r, 0.0)


# ----------------------------------------------------------------------------
# Full DepthLoss forward.
# ----------------------------------------------------------------------------
def depth_loss(rgbs, depths, surrogate_weights):
    n = rgbs.shape[0]
    # Surrogate infer_depth, folded before the resize (1 channel instead of 3).
    pred_low = surrogate_depth_lowres(rgbs, surrogate_weights)        # (N,H0,W0)
    # F.interpolate(..., (384, 384), mode='bilinear'): plain-JAX glue.
    pred_depth = jax.image.resize(pred_low, (n, DPT_RES, DPT_RES),
                                  method="bilinear", antialias=False)
    # Fused [384 -> (H1,W1) upsample] + masked Pearson; mask = depths > 0.
    return fused_upsample_masked_neg_pearson(pred_depth, depths)


if __name__ == "__main__":
    key = jax.random.PRNGKey(0)
    k_rgb, k_dep = jax.random.split(key)

    N, H0, W0 = 2, 16, 16      # rendered rgb resolution
    H1, W1 = 16, 16            # rendered depth resolution

    rgbs = jax.random.uniform(k_rgb, (N, 3, H0, W0), dtype=jnp.float32)
    # shift so ~30% of depths are <= 0 (masked out / background)
    depths = jax.random.uniform(k_dep, (N, H1, W1), dtype=jnp.float32) - 0.3

    # deterministic surrogate "model" parameters: (w_r, w_g, w_b, bias)
    surrogate_weights = (0.25, 0.5, 0.25, 0.1)

    loss = depth_loss(rgbs, depths, surrogate_weights)
    jax.block_until_ready(loss)
    print("KERNEL_OK")
</pallas_src>

<mosaic_0001>
module attributes {stable_mosaic.version = 11 : i64} {
  func.func @_combine_channels_kernel(%arg0: i32, %arg1: i32, %arg2: memref<1x3x8x16xf32, #tpu.memory_space<vmem>>, %arg3: memref<1x8x16xf32, #tpu.memory_space<vmem>>) attributes {dimension_semantics = [#tpu.dimension_semantics<parallel>, #tpu.dimension_semantics<parallel>], iteration_bounds = array<i64: 2, 2>, scalar_prefetch = 0 : i64, scratch_operands = 0 : i64, tpu.core_type = #tpu.core_type<tc>, window_params = [{transform_indices = @transform_0, window_bounds = array<i64: 1, 3, 8, 16>}, {transform_indices = @transform_1, window_bounds = array<i64: 1, 8, 16>}]} {
    %c0 = arith.constant 0 : index
    %c0_0 = arith.constant 0 : index
    %c0_1 = arith.constant 0 : index
    %c0_2 = arith.constant 0 : index
    %0 = vector.load %arg2[%c0, %c0_0, %c0_1, %c0_2] : memref<1x3x8x16xf32, #tpu.memory_space<vmem>>, vector<1x3x8x16xf32>
    %1 = vector.extract_strided_slice %0 {offsets = [0, 0, 0, 0], sizes = [1, 1, 8, 16], strides = [1, 1, 1, 1]} : vector<1x3x8x16xf32> to vector<1x1x8x16xf32>
    %2 = vector.shape_cast %1 : vector<1x1x8x16xf32> to vector<1x8x16xf32>
    %cst = arith.constant 2.500000e-01 : f32
    %3 = vector.broadcast %cst : f32 to vector<1x8x16xf32>
    %4 = arith.mulf %3, %2 : vector<1x8x16xf32>
    %5 = vector.extract_strided_slice %0 {offsets = [0, 1, 0, 0], sizes = [1, 1, 8, 16], strides = [1, 1, 1, 1]} : vector<1x3x8x16xf32> to vector<1x1x8x16xf32>
    %6 = vector.shape_cast %5 : vector<1x1x8x16xf32> to vector<1x8x16xf32>
    %cst_3 = arith.constant 5.000000e-01 : f32
    %7 = vector.broadcast %cst_3 : f32 to vector<1x8x16xf32>
    %8 = arith.mulf %7, %6 : vector<1x8x16xf32>
    %9 = arith.addf %4, %8 : vector<1x8x16xf32>
    %10 = vector.extract_strided_slice %0 {offsets = [0, 2, 0, 0], sizes = [1, 1, 8, 16], strides = [1, 1, 1, 1]} : vector<1x3x8x16xf32> to vector<1x1x8x16xf32>
    %11 = vector.shape_cast %10 : vector<1x1x8x16xf32> to vector<1x8x16xf32>
    %cst_4 = arith.constant 2.500000e-01 : f32
    %12 = vector.broadcast %cst_4 : f32 to vector<1x8x16xf32>
    %13 = arith.mulf %12, %11 : vector<1x8x16xf32>
    %14 = arith.addf %9, %13 : vector<1x8x16xf32>
    %cst_5 = arith.constant 1.000000e-01 : f32
    %15 = vector.broadcast %cst_5 : f32 to vector<1x8x16xf32>
    %16 = arith.addf %14, %15 : vector<1x8x16xf32>
    %c0_6 = arith.constant 0 : index
    %c0_7 = arith.constant 0 : index
    %c0_8 = arith.constant 0 : index
    %17 = vector.load %arg3[%c0_6, %c0_7, %c0_8] : memref<1x8x16xf32, #tpu.memory_space<vmem>>, vector<1x8x16xf32>
    tpu.vector_store %arg3[%c0_6, %c0_7, %c0_8], %16 {strides = array<i32>} : memref<1x8x16xf32, #tpu.memory_space<vmem>>, vector<1x8x16xf32>,
    return
  }
  func.func @transform_0(%arg0: i32, %arg1: i32) -> (i32, i32, i32, i32) {
    %c0_i32 = arith.constant 0 : i32
    %c0_i32_0 = arith.constant 0 : i32
    %c0_i32_1 = arith.constant 0 : i32
    return %arg0, %c0_i32, %arg1, %c0_i32_0 : i32, i32, i32, i32
  }
  func.func @transform_1(%arg0: i32, %arg1: i32) -> (i32, i32, i32) {
    %c0_i32 = arith.constant 0 : i32
    %c0_i32_0 = arith.constant 0 : i32
    return %arg0, %arg1, %c0_i32 : i32, i32, i32
  }
}

</mosaic_0001>

<bundles_post_ra>
// kernel: tpu_custom_call.1
= control target key start
LH: loop header
LB: loop body
LE: loop exit
PB: predicated region body
PF: predicated region fallthrough
CT: control target
= control target key end

     0   :  { %6 = vsyncpa [#allocation3], 0  ;;  %s654_s0 = inlined_call_operand.hbm [shape: f32[2,3,16,16], index: 0, kind: input, shape index: {}]   ;;  %s655_s1 = inlined_call_operand.hbm [shape: f32[2,16,16], index: 1, kind: output, shape index: {}]  }
   0x1   :  { %8 = vsyncpa [#allocation3 + $0x1], 0 }
   0x2   :  { %9 = vsyncpa [#allocation4], 0 }
   0x3   :  { %11 = vsyncpa [#allocation4 + $0x1], 0  ;;  %s501_s6 = smov 0   ;;  %s503_s7 = smov 0  }
   0x4   :  { %s505_s8 = smov 0   ;;  %s507_s9 = smov 0  }
   0x5   :  { %s509_s10 = smov 0   ;;  %s511_s11 = smov 0  }
   0x6   :  { %s513_s12 = smov 0   ;;  %s515_s13 = smov 0  }
   0x7 LB: > { %s264_s14 = sadd.s32 4294967295, %s484_s13   ;;  %s265_s15 = sadd.s32 4294967294, %s484_s13   ;;  %s484_s13 = sphi %s515_s13, %s17_s13   ;;  %s480_s12 = sphi %s513_s12, %s670_s12   ;;  %s476_s11 = sphi %s511_s11, %s669_s11   ;;  %s472_s10 = sphi %s509_s10, %s668_s10   ;;  %s468_s9 = sphi %s507_s9, %s667_s9   ;;  %s464_s8 = sphi %s505_s8, %s666_s8   ;;  %s460_s7 = sphi %s503_s7, %s665_s7   ;;  %s456_s6 = sphi %s501_s6, %s664_s6  }
   0x8   : > { %s26_s16 = sadd.s32 1, %s476_s11  ;;  %s29_s17 = sadd.s32 1, %s480_s12 }
   0x9   : > { %p27_p0 = scmp.ge.s32.totalorder %s26_s16, 2  ;;  %s38_s18 = sadd.s32 1, %s464_s8 }
   0xa   : > { %p45_p1 = scmp.ne.s32.totalorder %s464_s8, %s460_s7  ;;  %p46_p2 = scmp.eq.s32.totalorder %s484_s13, 0 }
   0xb   : > { %s672_s16 = smov (%p27_p0, %s26_s16), 0  ;;  %s674_s17 = smov (!%p27_p0, %s29_s17), %s480_s12 }
   0xc   : > { %s34_s19 = ssub.s32 %s476_s11, %s672_s16  ;;  %p554_p3 = por %p46_p2, %p45_p1 }
   0xd   : > { %p31_p4 = scmp.ge.s32.totalorder %s674_s17, 2  ;;  %p51_p5 = scmp.ne.s32.totalorder %s460_s7, %s456_s6 }
   0xe   : > { %p52_p6 = scmp.eq.s32.totalorder %s264_s14, 0  ;;  %p77_p7 = scmp.eq.s32.totalorder %s264_s14, 3 }
   0xf   : > { %s676_s17 = smov (%p31_p4, %s674_s17), 0  ;;  %p83_p10 = scmp.eq.s32.totalorder %s265_s15, 3 }
  0x10   : > { %658 = sst [smem:[#allocation8_spill]] %s676_s17  ;;  %p562_p8 = por %p52_p6, %p51_p5 }
  0x11   : > { %p566_p9 = por %p77_p7, %p45_p1  ;;  %s33_s23 = ssub.s32 %s480_s12, %s676_s17 }
  0x12   : > { %s35_s24 = sor.u32 %s34_s19, %s33_s23  ;;  %p572_p12 = por %p83_p10, %p51_p5 }
  0x13   : > { %p36_p11 = scmp.eq.s32.totalorder %s35_s24, 0  ;;  %p291_p13 = scmp.lt.s32.totalorder %s484_s13, 4 }
  0x14   : > { %s103_s26 = sand.u32 1, %s464_s8   ;;  %s277_s29 = smul.u32 6, %s480_s12 }
  0x15   : > { %s579_s27 = scalar_select %p36_p11, %s464_s8, %s38_s18  }
  0x16   : > { %s276_s28 = smul.u32 24, %s103_s26  ;;  %p584_p0 = pnand %p291_p13, %p554_p3 }
  0x17   : > { %s112_s2 = sadd.s32 %s476_s11, %s277_s29  ;;  %s104_s23 = scalar_lea.sflag [#allocation3], %s103_s26 }
  0x18   : > { %s107_s3 = scalar_lea.vmem [#allocation2], %s276_s28  ;;  %s268_s5 = sshll.u32 %s112_s2, 7 }
  0x19   : > { %s115_s4 = sshll.u32 %s107_s3, 4  ;;  %s114_s19 = scalar_lea.hbm %s654_s0, %s268_s5  ;;  %s116_s4 = int_to_ptr.vmem [resolvable:$true] %s115_s4 }
  0x1a   : > { %p362_p1 = pneg %p584_p0  ;;  %s373_s18 = scalar_lea.vmem %s116_s4, 384 }
  0x1b   : > { %p374_p2 = scmp.ne.s32.totalorder %s116_s4, %s373_s18  ;;  %s486_s20 = smov [#allocation2]  }
  0x1c   : > { %s378_s24 = sshll.u32 %s486_s20, 4  ;;  %s379_s24 = int_to_ptr.vmem [resolvable:$false] %s378_s24 }
  0x1d   : > { %p376_p4 = pnand %p374_p2, %p362_p1  ;;  %s380_s17 = scalar_lea.vmem %s379_s24, 768 }
  0x1e   : > { %p381_p5 = scmp.lt.s32.totalorder %s116_s4, %s379_s24  ;;  %p382_p6 = scmp.lt.s32.totalorder %s380_s17, %s373_s18 }
  0x1f   : > { %p377_p3 = pneg %p376_p4 }
  0x20   : > { %p383_p7 = por %p382_p6, %p381_p5 }
  0x22   : > { %p384_p10 = pnand %p383_p7, %p377_p3 }
  0x24   : > { %387 = shalt.err (!%p384_p10)
}
  0x25   : > { %s487_s28 = smov 256   ;;  %s488_s26 = smov 128  }
  0x26   : > { %s489_s29 = smov 8   ;;  %p269_p11 = scmp.ge.s32.totalorder %s484_s13, 1 }
  0x27   : > { %286 = dma.hbm_to_vmem [thread:$0]  (!%p584_p0), %s114_s19, 384, %s116_s4, %s104_s23, %s487_s28, %s488_s26, %s489_s29  }
  0x28   : > { %p123_p13 = scmp.lt.s32.totalorder %s484_s13, 5 }
  0x2a   : > { %p124_p1 = pnand %p269_p11, %p123_p13 }
  0x2b   : > { %s599_s2 = sand.u32 (!%p124_p1), 1, %s460_s7  }
  0x2c   : > { %127 = sbr.rel (%p124_p1) target bundleno = 75 (0x4b), region = 24  ;;  %s130_s3 = scalar_lea.sflag (!%p124_p1), [#allocation3], %s599_s2 }
  0x2d   : > { %s278_s17 = smul.u32 (!%p124_p1), 24, %s599_s2 }
  0x2f   : > { %s133_s5 = scalar_lea.vmem (!%p124_p1), [#allocation2], %s278_s17 }
  0x31   : > { %447 = dma.done.wait (%p562_p8), %s130_s3, 384  }
  0x32   : > { %449 = vsyncadd (%p562_p8), %s130_s3, 4294966912  ;;  %s270_s30 = sshll.u32 %s599_s2, 3  ;;  %s272_s4 = sshll.u32 %s472_s10, 1  ;;  %v152_v0 = vld [vmem:[%s133_s5] sm:$0xff]  ;;  %v153_v1 = vld [vmem:[%s133_s5 + $0x8] sm:$0xff]  ;;  %vm161_vm0 = vcmask 130048  }
  0x33   : > { %v154_v2 = vld [vmem:[%s133_s5 + $0x10] sm:$0xff]  ;;  %v155_v3 = vmul.f32 0.25, %v152_v0  ;;  %v156_v4 = vmul.f32 0.5, %v153_v1  ;;  %s175_s14 = sadd.s32 %s468_s9, %s272_s4  ;;  %s151_s15 = scalar_lea.vmem [#allocation5], %s270_s30 }
  0x34   : > { %v158_v5 = vmul.f32 0.25, %v154_v2  ;;  %s179_s19 = sshll.u32 %s151_s15, 4  ;;  %s273_s23 = sshll.u32 %s175_s14, 7  ;;  %s180_s19 = int_to_ptr.vmem [resolvable:$true] %s179_s19 }
  0x35   : > { %v157_v6 = vadd.f32 %v156_v4, %v155_v3  ;;  %s177_s10 = scalar_lea.hbm %s655_s1, %s273_s23  ;;  %s164_s20 = scalar_lea.sflag [#allocation4], %s599_s2 }
  0x36   : > { %s388_s24 = scalar_lea.vmem %s180_s19, 128  ;;  %s490_s9 = smov [#allocation5]  }
  0x37   : > { %v159_v7 = vadd.f32 %v158_v5, %v157_v6  ;;  %p389_p8 = scmp.ne.s32.totalorder %s180_s19, %s388_s24  ;;  %s392_s28 = sshll.u32 %s490_s9, 4  ;;  %s393_s28 = int_to_ptr.vmem [resolvable:$false] %s392_s28 }
  0x38   : > { %s394_s26 = scalar_lea.vmem %s393_s28, 256  ;;  %p395_p4 = scmp.lt.s32.totalorder %s180_s19, %s393_s28 }
  0x39   : > { %v160_v8 = vadd.f32 0.1, %v159_v7  ;;  %p390_p0 = pnand %p389_p8, %p566_p9  ;;  %p396_p3 = scmp.lt.s32.totalorder %s394_s26, %s388_s24 }
  0x3b   : > { %162 = vst.msk [vmem:[%s151_s15] sm:$0xff] %vm161_vm0, %v160_v8  ;;  %p391_p2 = pneg %p390_p0  ;;  %p397_p5 = por %p396_p3, %p395_p4 }
  0x3d   : > { %p398_p6 = pnand %p397_p5, %p391_p2 }
  0x3f   : > { %401 = shalt.err (!%p398_p6)
}
  0x40   : > { %s402_s29 = scalar_lea.hbm %s177_s10, 128  ;;  %s406_s3 = scalar_lea.hbm %s655_s1, 512 }
  0x41   : > { %p403_p7 = scmp.ne.s32.totalorder %s177_s10, %s402_s29  ;;  %p407_p13 = scmp.lt.s32.totalorder %s177_s10, %s655_s1 }
  0x42   : > { %p408_p1 = scmp.lt.s32.totalorder %s406_s3, %s402_s29 }
  0x43   : > { %p404_p10 = pnand %p403_p7, %p566_p9 }
  0x44   : > { %p409_p8 = por %p408_p1, %p407_p13 }
  0x45   : > { %p405_p11 = pneg %p404_p10 }
  0x47   : > { %p410_p0 = pnand %p409_p8, %p405_p11 }
  0x49   : > { %413 = shalt.err (!%p410_p0)
}
  0x4a   : > { %281 = dma.vmem_to_hbm [thread:$0]  (%p566_p9), %s180_s19, 128, %s177_s10, %s164_s20  }
  0x4b PF: > { %p292_p2 = scmp.ge.s32.totalorder %s484_s13, 2  ;;  %s191_s4 = sand.u32 1, %s456_s6  }
  0x4c   : > { %s192_s14 = scalar_lea.sflag [#allocation4], %s191_s4 }
  0x4d   : > { %p288_p4 = pnand %p292_p2, %p572_p12 }
  0x4f   : > { %p289_p3 = pneg %p288_p4 }
  0x51   : > { %451 = dma.done.wait (%p289_p3), %s192_s14, 128  }
  0x52   : > { %453 = vsyncadd (%p289_p3), %s192_s14, 4294967168  ;;  %s17_s13 = sadd.s32 1, %s484_s13   ;;  %s663_s22 = sld [smem:[#allocation8_spill]] }
  0x53   : > { %p14_p5 = scmp.ge.s32.totalorder %s17_s13, 6   ;;  %s664_s6 = smov %s460_s7 }
  0x54   : > { %s665_s7 = smov %s464_s8  ;;  %s666_s8 = smov %s579_s27 }
  0x55   : > { %s667_s9 = smov %s476_s11  ;;  %s668_s10 = smov %s480_s12 }
  0x56   : > { %s669_s11 = smov %s672_s16  ;;  %16 = sbr.rel (!%p14_p5) target bundleno = 7 (0x7), region = 69 }
  0x58   : > { %s670_s12 = smov %s663_s22 }
  0x5b   :  { %197 = vsyncpa [#allocation3], 1 }
  0x5c   :  { %199 = vsyncpa [#allocation3 + $0x1], 1 }
  0x5d   :  { %200 = vsyncpa [#allocation4], 1 }
  0x5e   :  { %202 = vsyncpa [#allocation4 + $0x1], 1 }

</bundles_post_ra>
